<compile_context>
chip_gen: v7x
topology: tpu7x:2x2x1
jax: 0.10.0
libtpu: 0.0.40
codegen_flags: <defaults>
</compile_context>

<pallas_src>
import itertools
from math import pi

import numpy as np
import jax
import jax.numpy as jnp
from jax import lax
from jax.experimental import pallas as pl
from jax.experimental.pallas import tpu as pltpu


# ----------------------------- Pallas kernel -------------------------------

def _build_fused_call(xy_pad, P, P_pad, psf_h, psf_w, Rf):
    """Build the single-grid-step fused forward (pallas_call built once)."""

    def kernel(ivec_ref, fvec_ref, m0_ref, m1_ref, nn0_ref, nn1_ref,
               out_ref, flag_ref):
        del ivec_ref                       # consumed by the index_maps only

        # --- plane fit + PCA inverse_transform for both z planes ----------
        # fvec rows [0:xy_num): order-1 surface-fit weights (3 non-zeros),
        # row xy_num: 1.0 (weight of the folded PCA-mean row), rest zero.
        w = fvec_ref[0:xy_pad, :]                                   # (xy_pad, 1)
        r0 = jnp.sum(m0_ref[0] * w, axis=0, keepdims=True)          # (1, P_pad)
        r1 = jnp.sum(m1_ref[0] * w, axis=0, keepdims=True)          # (1, P_pad)

        # --- joint nn-fallback check over both fitted planes --------------
        rlo = jnp.minimum(r0, r1)
        rhi = jnp.maximum(r0, r1)
        if P_pad != P:                     # keep pad lanes out of min/max
            lane = lax.broadcasted_iota(jnp.int32, (1, P_pad), 1)
            valid = lane < P
            rlo = jnp.where(valid, rlo, jnp.inf)
            rhi = jnp.where(valid, rhi, -jnp.inf)
        lo = jnp.min(rlo, axis=1, keepdims=True)                    # (1, 1)
        hi = jnp.max(rhi, axis=1, keepdims=True)                    # (1, 1)
        use_nn = jnp.abs(lo) > 0.1 * hi                             # (1, 1) bool
        a0 = jnp.where(use_nn, nn0_ref[0], r0)
        a1 = jnp.where(use_nn, nn1_ref[0], r1)

        # --- 2-sample axial PCA (all comps) + per-column linear interp ----
        # collapses exactly to linear interpolation between the two rows.
        wz0 = fvec_ref[xy_pad:xy_pad + 1, :]                        # (1, 1)
        wz1 = fvec_ref[xy_pad + 8:xy_pad + 9, :]                    # (1, 1)
        out_ref[...] = jnp.abs(a0 * wz0 + a1 * wz1)
        flag_ref[0, 0] = jnp.sum(use_nn.astype(jnp.int32))          # SMEM scalar

    grid_spec = pltpu.PrefetchScalarGridSpec(
        num_scalar_prefetch=1,                 # ivec: [iz0, iz1, nnrow0, nnrow1]
        grid=(1,),
        in_specs=[
            pl.BlockSpec((Rf, 1), lambda i, iv: (0, 0)),                    # fvec
            pl.BlockSpec((1, xy_pad, P_pad), lambda i, iv: (iv[0], 0, 0)),  # M_aug[z0]
            pl.BlockSpec((1, xy_pad, P_pad), lambda i, iv: (iv[1], 0, 0)),  # M_aug[z1]
            pl.BlockSpec((1, 1, P_pad), lambda i, iv: (iv[2], 0, 0)),       # nn psf z0
            pl.BlockSpec((1, 1, P_pad), lambda i, iv: (iv[3], 0, 0)),       # nn psf z1
        ],
        out_specs=(
            pl.BlockSpec((1, P_pad), lambda i, iv: (0, 0)),                 # psf row
            pl.BlockSpec(memory_space=pltpu.MemorySpace.SMEM),              # nn flag
        ),
    )
    call = pl.pallas_call(
        kernel,
        out_shape=(jax.ShapeDtypeStruct((1, P_pad), jnp.float32),
                   jax.ShapeDtypeStruct((1, 1), jnp.int32)),
        grid_spec=grid_spec,
        compiler_params=pltpu.CompilerParams(dimension_semantics=("arbitrary",)),
    )

    @jax.jit
    def fwd(ivec, fvec, m_aug, nn_stack):
        psf_flat, flag = call(ivec, fvec, m_aug, m_aug, nn_stack, nn_stack)
        # slice off lane padding + reshape inside the same compiled program
        return psf_flat[:, :P].reshape(psf_h, psf_w), flag

    return fwd


# --------------------------- host-side helpers ------------------------------

class SimplePCA:
    """Deterministic numpy replacement for sklearn.decomposition.PCA."""

    def __init__(self, n_components=None):
        self.n_components = n_components

    def fit_transform(self, X):
        # TODO(synk): data-dependent SVD (variable rank) has no clean Pallas equivalent.
        X = np.asarray(X, dtype=np.float64)
        n_samples, n_features = X.shape
        self.mean_ = X.mean(axis=0)
        Xc = X - self.mean_
        U, S, Vt = np.linalg.svd(Xc, full_matrices=False)
        max_abs = np.argmax(np.abs(U), axis=0)
        signs = np.sign(U[max_abs, np.arange(U.shape[1])])
        signs[signs == 0] = 1.0
        U = U * signs
        Vt = Vt * signs[:, None]
        ev = (S ** 2) / max(n_samples - 1, 1)
        total = ev.sum()
        ratio = ev / total if total > 0 else np.zeros_like(ev)
        if self.n_components is None:
            k = min(n_samples, n_features)
        elif isinstance(self.n_components, float):
            k = int(np.searchsorted(np.cumsum(ratio), self.n_components,
                                    side="right") + 1)
            k = min(k, len(S))
        else:
            k = int(self.n_components)
        self.components_ = Vt[:k]
        self.n_components_ = k
        return U[:, :k] * S[:k]


def _poly_basis(xy, order):
    # terms x^i * y^j with i + j <= order (any fixed ordering spans the same model)
    xy = np.asarray(xy, dtype=np.float64)
    x, y = xy[:, 0], xy[:, 1]
    cols = []
    for total in range(order + 1):
        for i in range(total + 1):
            j = total - i
            cols.append((x ** i) * (y ** j))
    return np.stack(cols, axis=1)


class PPGxyzPallas:
    """Pallas/JAX port of PPG_xyz (forward semantics preserved)."""

    def __init__(self, all_psfs, xy_pos, z_pos):
        self.all_psfs = np.asarray(all_psfs, dtype=np.float64)
        self.xy_num, self.z_num = self.all_psfs.shape[0], self.all_psfs.shape[1]
        self.psf_size = self.all_psfs.shape[2:]
        self.pca_variance = 0.95
        self.pca_list, self.pca_X_new_list = [], []
        for i in range(self.z_num):
            X = self.all_psfs[:, i, :, :].reshape(self.xy_num, -1)
            pca = SimplePCA(n_components=self.pca_variance)
            X_new = pca.fit_transform(X)
            self.pca_list.append(pca)
            self.pca_X_new_list.append(X_new)
        self.xy_pos = np.asarray(xy_pos, dtype=np.float64)
        if self.xy_pos.shape[0] != self.xy_num:
            raise Exception('xy number mismatch in psf data and position data!')
        self.x_range = [np.min(self.xy_pos[:, 0]), np.max(self.xy_pos[:, 0])]
        self.y_range = [np.min(self.xy_pos[:, 1]), np.max(self.xy_pos[:, 1])]
        self.z_pos = np.asarray(z_pos, dtype=np.float64)
        self.z_range = [np.min(self.z_pos), np.max(self.z_pos)]
        self.num_pick1 = 7
        self.num_pick2 = 13
        self.fitting_num_xy = 3
        self.fitting_order = 1
        self.fitting_num_z = 2
        self.max_r = np.max(np.sqrt(np.sum(self.xy_pos ** 2, axis=1)))

        # ---- device-resident, pre-contracted & padded tables (built once) ----
        psf_h, psf_w = int(self.psf_size[0]), int(self.psf_size[1])
        P = psf_h * psf_w
        P_pad = ((P + 127) // 128) * 128                 # lane-dense last dim
        xy_pad = ((self.xy_num + 1 + 7) // 8) * 8        # +1 row for folded PCA mean
        Rf = xy_pad + 16                                 # + 2 sublane-aligned z-weight rows

        m_aug = np.zeros((self.z_num, xy_pad, P_pad), np.float32)
        for zi, (pca, Xn) in enumerate(zip(self.pca_list, self.pca_X_new_list)):
            M = Xn @ pca.components_                     # (xy_num, P) in float64
            m_aug[zi, :self.xy_num, :P] = M.astype(np.float32)
            m_aug[zi, self.xy_num, :P] = pca.mean_.astype(np.float32)
        nn_stack = np.zeros((self.xy_num * self.z_num, 1, P_pad), np.float32)
        nn_stack[:, 0, :P] = self.all_psfs.reshape(
            self.xy_num * self.z_num, P).astype(np.float32)

        self._P, self._P_pad, self._xy_pad, self._Rf = P, P_pad, xy_pad, Rf
        self._psf_h, self._psf_w = psf_h, psf_w
        self._m_dev = jnp.asarray(m_aug)        # (Z, xy_pad, P_pad): scores@components (+mean row)
        self._nn_dev = jnp.asarray(nn_stack)    # (XY*Z, 1, P_pad): raw calibration PSFs
        self._fused = _build_fused_call(xy_pad, P, P_pad, psf_h, psf_w, Rf)

        # lazy nn_flag plumbing (no blocking D2H inside forward)
        self._nn_flag_dev = None
        self._nn_flag_host = True

    # --------------------------- nn_flag (lazy sync) -------------------------
    @property
    def nn_flag(self):
        if self._nn_flag_dev is not None:
            self._nn_flag_host = not bool(int(np.asarray(self._nn_flag_dev)[0, 0]))
            self._nn_flag_dev = None
        return self._nn_flag_host

    @nn_flag.setter
    def nn_flag(self, value):
        self._nn_flag_dev = None
        self._nn_flag_host = bool(value)

    # ------------------ host-side point selection (matches reference) -------
    def _best_combination(self, indices_xy, xy):
        # TODO(synk): argpartition + combinatorial angle-variance search stays on host.
        all_combinations = list(itertools.combinations(indices_xy,
                                                       self.fitting_num_xy))
        angle_variance_list = []
        for combination in all_combinations:
            vectors = self.xy_pos[list(combination), :] - xy
            angles = np.sort(np.angle(vectors[:, 0] + 1j * vectors[:, 1]))
            target_mean_angle = 2 * pi / self.fitting_num_xy
            angle_variance = np.sum(
                (angles[1:] - angles[:-1] - target_mean_angle) ** 2
            ) / (self.fitting_num_xy - 1)
            angle_variance_list.append(angle_variance)
        return all_combinations[int(np.argmin(angle_variance_list))]

    def select_points(self, xy, distances_xy):
        self.min_idx = int(np.argmin(distances_xy))
        indices_xy = np.argpartition(distances_xy, self.num_pick1)[:self.num_pick1]
        final_idx = self._best_combination(indices_xy, xy)
        xys1 = self.xy_pos[list(final_idx), :]
        xmin, xmax = xys1[:, 0].min(), xys1[:, 0].max()
        ymin, ymax = xys1[:, 1].min(), xys1[:, 1].max()
        inside = (xy[0, 0] > xmin and xy[0, 0] < xmax
                  and xy[0, 1] > ymin and xy[0, 1] < ymax)
        if not inside:
            indices_xy = np.argpartition(distances_xy, self.num_pick2)[:self.num_pick2]
            final_idx = self._best_combination(indices_xy, xy)
        return list(final_idx)

    # -------------------------------- forward -------------------------------
    def forward(self, x, y, z):
        target_xy = np.array([[x, y]], dtype=np.float64)

        # distances & selection in float64 on host (tiny; matches reference)
        distances_xy = np.sum((self.xy_pos - target_xy) ** 2, axis=1)
        indices_xy = self.select_points(target_xy, distances_xy)
        xys = self.xy_pos[indices_xy, :]
        distances_z = (self.z_pos - z) ** 2
        indices_z = np.argpartition(distances_z, self.fitting_num_z)[:self.fitting_num_z]
        zs = self.z_pos[indices_z]

        # order-1 surface fit+eval collapses to fixed weights w = b @ pinv(A).
        # TODO(synk): tiny 3x3 pseudo-inverse stays on host.
        A = _poly_basis(xys, self.fitting_order)            # (3, 3)
        b = _poly_basis(target_xy, self.fitting_order)      # (1, 3)
        w = (b @ np.linalg.pinv(A)).ravel()                 # (3,)

        # axial linear-interp weight (guards duplicate z planes; extrapolates
        # outside [zs.min(), zs.max()] instead of raising like scipy.interp1d)
        denom = zs[1] - zs[0]
        t = 0.0 if abs(denom) < 1e-12 else float((z - zs[0]) / denom)

        # one float32 H2D: plane-fit weights | folded-mean weight | z weights
        fvec = np.zeros((self._Rf, 1), dtype=np.float32)
        fvec[np.asarray(indices_xy, dtype=np.int64), 0] = w.astype(np.float32)
        fvec[self.xy_num, 0] = 1.0                  # weight of folded PCA-mean row
        fvec[self._xy_pad, 0] = 1.0 - t             # axial weight, plane 0
        fvec[self._xy_pad + 8, 0] = t               # axial weight, plane 1

        # one int32 H2D: selected z planes + nearest-neighbour PSF rows
        iz0, iz1 = int(indices_z[0]), int(indices_z[1])
        ivec = np.array([iz0, iz1,
                         self.min_idx * self.z_num + iz0,
                         self.min_idx * self.z_num + iz1], dtype=np.int32)

        psf, flag = self._fused(ivec, fvec, self._m_dev, self._nn_dev)
        self._nn_flag_dev = flag                    # lazy D2H (see nn_flag property)
        return psf


# --------------------------------- demo -------------------------------------

if __name__ == "__main__":
    key = jax.random.PRNGKey(0)

    # calibration data: 5x5 lateral grid, 5 axial planes, 16x16 PSFs
    grid1d = np.linspace(-8.0, 8.0, 5)
    gx, gy = np.meshgrid(grid1d, grid1d, indexing="ij")
    xy_pos = np.stack([gx.ravel(), gy.ravel()], axis=1)          # (25, 2)
    z_pos = np.linspace(-1.0, 1.0, 5)                            # (5,)
    H = W = 16
    yy, xx = np.meshgrid(np.arange(H) - (H - 1) / 2.0,
                         np.arange(W) - (W - 1) / 2.0, indexing="ij")
    all_psfs = np.zeros((xy_pos.shape[0], z_pos.shape[0], H, W))
    for i in range(xy_pos.shape[0]):
        for k in range(z_pos.shape[0]):
            sigma = 1.5 + 0.6 * abs(z_pos[k]) + 0.02 * np.hypot(xy_pos[i, 0],
                                                                xy_pos[i, 1])
            cx = 0.15 * xy_pos[i, 0]
            cy = 0.15 * xy_pos[i, 1]
            g = np.exp(-(((xx - cx) ** 2 + (yy - cy) ** 2) / (2.0 * sigma ** 2)))
            all_psfs[i, k] = g / g.sum()
    noise = np.asarray(jax.random.uniform(key, all_psfs.shape, dtype=jnp.float32))
    all_psfs = all_psfs + 0.002 * all_psfs.max() * noise

    model = PPGxyzPallas(all_psfs, xy_pos, z_pos)
    psf = model.forward(1.5, -2.3, 0.3)          # x, y [um-like coords], z [um]
    psf = jax.block_until_ready(psf)

    assert psf.shape == tuple(model.psf_size)
    assert bool(jnp.all(jnp.isfinite(psf)))
    assert isinstance(model.nn_flag, bool)       # exercises the lazy flag sync
    print("KERNEL_OK")
</pallas_src>

<mosaic_0001>
module attributes {stable_mosaic.version = 11 : i64} {
  func.func @kernel(%arg0: i32, %arg1: memref<4xi32, #tpu.memory_space<smem>>, %arg2: memref<48x1xf32, #tpu.memory_space<vmem>>, %arg3: memref<1x32x256xf32, #tpu.memory_space<vmem>>, %arg4: memref<1x32x256xf32, #tpu.memory_space<vmem>>, %arg5: memref<1x1x256xf32, #tpu.memory_space<vmem>>, %arg6: memref<1x1x256xf32, #tpu.memory_space<vmem>>, %arg7: memref<1x256xf32, #tpu.memory_space<vmem>>, %arg8: memref<1x1xi32, #tpu.memory_space<smem>>) attributes {dimension_semantics = [#tpu.dimension_semantics<arbitrary>], iteration_bounds = array<i64: 1>, scalar_prefetch = 1 : i64, scratch_operands = 0 : i64, tpu.core_type = #tpu.core_type<tc>, window_params = [{pipeline_mode = #tpu.pipeline_mode<synchronous>, transform_indices = @transform_0, window_bounds = array<i64: 48, 1>}, {transform_indices = @transform_1, window_bounds = array<i64: 1, 32, 256>}, {transform_indices = @transform_2, window_bounds = array<i64: 1, 32, 256>}, {transform_indices = @transform_3, window_bounds = array<i64: 1, 1, 256>}, {transform_indices = @transform_4, window_bounds = array<i64: 1, 1, 256>}, {pipeline_mode = #tpu.pipeline_mode<synchronous>, transform_indices = @transform_5, window_bounds = array<i64: 1, 256>}, {transform_indices = @transform_6, window_bounds = array<i64: 1, 1>}]} {
    %c0 = arith.constant 0 : index
    %c0_0 = arith.constant 0 : index
    %0 = vector.load %arg2[%c0, %c0_0] : memref<48x1xf32, #tpu.memory_space<vmem>>, vector<32x1xf32>
    %c0_1 = arith.constant 0 : index
    %c0_2 = arith.constant 0 : index
    %c0_3 = arith.constant 0 : index
    %1 = vector.load %arg3[%c0_1, %c0_2, %c0_3] : memref<1x32x256xf32, #tpu.memory_space<vmem>>, vector<1x32x256xf32>
    %2 = vector.shape_cast %1 : vector<1x32x256xf32> to vector<32x256xf32>
    %3 = vector.broadcast %0 : vector<32x1xf32> to vector<32x256xf32>
    %4 = arith.mulf %2, %3 : vector<32x256xf32>
    %cst = arith.constant dense<0.000000e+00> : vector<256xf32>
    %5 = vector.multi_reduction <add>, %4, %cst [0] : vector<32x256xf32> to vector<256xf32>
    %6 = vector.shape_cast %5 : vector<256xf32> to vector<1x256xf32>
    %c0_4 = arith.constant 0 : index
    %c0_5 = arith.constant 0 : index
    %c0_6 = arith.constant 0 : index
    %7 = vector.load %arg4[%c0_4, %c0_5, %c0_6] : memref<1x32x256xf32, #tpu.memory_space<vmem>>, vector<1x32x256xf32>
    %8 = vector.shape_cast %7 : vector<1x32x256xf32> to vector<32x256xf32>
    %9 = vector.broadcast %0 : vector<32x1xf32> to vector<32x256xf32>
    %10 = arith.mulf %8, %9 : vector<32x256xf32>
    %cst_7 = arith.constant dense<0.000000e+00> : vector<256xf32>
    %11 = vector.multi_reduction <add>, %10, %cst_7 [0] : vector<32x256xf32> to vector<256xf32>
    %12 = vector.shape_cast %11 : vector<256xf32> to vector<1x256xf32>
    %13 = arith.minimumf %6, %12 : vector<1x256xf32>
    %14 = arith.maximumf %6, %12 : vector<1x256xf32>
    %cst_8 = arith.constant dense<0x7F800000> : vector<1xf32>
    %15 = vector.multi_reduction <minimumf>, %13, %cst_8 [1] : vector<1x256xf32> to vector<1xf32>
    %16 = vector.shape_cast %15 : vector<1xf32> to vector<1x1xf32>
    %cst_9 = arith.constant dense<0xFF800000> : vector<1xf32>
    %17 = vector.multi_reduction <maximumf>, %14, %cst_9 [1] : vector<1x256xf32> to vector<1xf32>
    %18 = vector.shape_cast %17 : vector<1xf32> to vector<1x1xf32>
    %19 = math.absf %16 : vector<1x1xf32>
    %cst_10 = arith.constant 1.000000e-01 : f32
    %20 = vector.broadcast %cst_10 : f32 to vector<1x1xf32>
    %21 = arith.mulf %20, %18 : vector<1x1xf32>
    %22 = arith.cmpf ogt, %19, %21 : vector<1x1xf32>
    %c0_11 = arith.constant 0 : index
    %c0_12 = arith.constant 0 : index
    %c0_13 = arith.constant 0 : index
    %23 = vector.load %arg5[%c0_11, %c0_12, %c0_13] : memref<1x1x256xf32, #tpu.memory_space<vmem>>, vector<1x1x256xf32>
    %24 = vector.shape_cast %23 : vector<1x1x256xf32> to vector<1x256xf32>
    %25 = vector.shape_cast %22 : vector<1x1xi1> to vector<1x1xi1>
    %26 = vector.broadcast %25 : vector<1x1xi1> to vector<1x256xi1>
    %27 = arith.select %26, %24, %6 : vector<1x256xi1>, vector<1x256xf32>
    %c0_14 = arith.constant 0 : index
    %c0_15 = arith.constant 0 : index
    %c0_16 = arith.constant 0 : index
    %28 = vector.load %arg6[%c0_14, %c0_15, %c0_16] : memref<1x1x256xf32, #tpu.memory_space<vmem>>, vector<1x1x256xf32>
    %29 = vector.shape_cast %28 : vector<1x1x256xf32> to vector<1x256xf32>
    %30 = vector.shape_cast %22 : vector<1x1xi1> to vector<1x1xi1>
    %31 = vector.broadcast %30 : vector<1x1xi1> to vector<1x256xi1>
    %32 = arith.select %31, %29, %12 : vector<1x256xi1>, vector<1x256xf32>
    %c32 = arith.constant 32 : index
    %c0_17 = arith.constant 0 : index
    %33 = vector.load %arg2[%c32, %c0_17] : memref<48x1xf32, #tpu.memory_space<vmem>>, vector<1x1xf32>
    %c40 = arith.constant 40 : index
    %c0_18 = arith.constant 0 : index
    %34 = vector.load %arg2[%c40, %c0_18] : memref<48x1xf32, #tpu.memory_space<vmem>>, vector<1x1xf32>
    %35 = vector.broadcast %33 : vector<1x1xf32> to vector<1x256xf32>
    %36 = arith.mulf %27, %35 : vector<1x256xf32>
    %37 = vector.broadcast %34 : vector<1x1xf32> to vector<1x256xf32>
    %38 = arith.mulf %32, %37 : vector<1x256xf32>
    %39 = arith.addf %36, %38 : vector<1x256xf32>
    %40 = math.absf %39 : vector<1x256xf32>
    %c0_19 = arith.constant 0 : index
    %c0_20 = arith.constant 0 : index
    %41 = vector.load %arg7[%c0_19, %c0_20] : memref<1x256xf32, #tpu.memory_space<vmem>>, vector<1x256xf32>
    tpu.vector_store %arg7[%c0_19, %c0_20], %40 {strides = array<i32>} : memref<1x256xf32, #tpu.memory_space<vmem>>, vector<1x256xf32>,
    %42 = arith.extui %22 : vector<1x1xi1> to vector<1x1xi32>
    %43 = vector.shape_cast %42 : vector<1x1xi32> to vector<1x1x1xi32>
    %cst_21 = arith.constant dense<0> : vector<1xi32>
    %44 = vector.multi_reduction <add>, %43, %cst_21 [1, 2] : vector<1x1x1xi32> to vector<1xi32>
    %45 = vector.shape_cast %44 : vector<1xi32> to vector<1x1x1xi32>
    %46 = vector.extract %45[0, 0, 0] : i32 from vector<1x1x1xi32>
    %c0_22 = arith.constant 0 : index
    %c0_23 = arith.constant 0 : index
    %47 = memref.load %arg8[%c0_22, %c0_23] : memref<1x1xi32, #tpu.memory_space<smem>>
    memref.store %46, %arg8[%c0_22, %c0_23] : memref<1x1xi32, #tpu.memory_space<smem>>
    return
  }
  func.func @transform_0(%arg0: i32, %arg1: memref<4xi32, #tpu.memory_space<smem>>) -> (i32, i32) {
    %c0_i32 = arith.constant 0 : i32
    %c0_i32_0 = arith.constant 0 : i32
    %c0_i32_1 = arith.constant 0 : i32
    return %c0_i32, %c0_i32_0 : i32, i32
  }
  func.func @transform_1(%arg0: i32, %arg1: memref<4xi32, #tpu.memory_space<smem>>) -> (i32, i32, i32) {
    %c0 = arith.constant 0 : index
    %0 = memref.load %arg1[%c0] : memref<4xi32, #tpu.memory_space<smem>>
    %c0_i32 = arith.constant 0 : i32
    %c0_i32_0 = arith.constant 0 : i32
    %c0_i32_1 = arith.constant 0 : i32
    return %0, %c0_i32, %c0_i32_0 : i32, i32, i32
  }
  func.func @transform_2(%arg0: i32, %arg1: memref<4xi32, #tpu.memory_space<smem>>) -> (i32, i32, i32) {
    %c1 = arith.constant 1 : index
    %0 = memref.load %arg1[%c1] : memref<4xi32, #tpu.memory_space<smem>>
    %c0_i32 = arith.constant 0 : i32
    %c0_i32_0 = arith.constant 0 : i32
    %c0_i32_1 = arith.constant 0 : i32
    return %0, %c0_i32, %c0_i32_0 : i32, i32, i32
  }
  func.func @transform_3(%arg0: i32, %arg1: memref<4xi32, #tpu.memory_space<smem>>) -> (i32, i32, i32) {
    %c2 = arith.constant 2 : index
    %0 = memref.load %arg1[%c2] : memref<4xi32, #tpu.memory_space<smem>>
    %c0_i32 = arith.constant 0 : i32
    %c0_i32_0 = arith.constant 0 : i32
    %c0_i32_1 = arith.constant 0 : i32
    return %0, %c0_i32, %c0_i32_0 : i32, i32, i32
  }
  func.func @transform_4(%arg0: i32, %arg1: memref<4xi32, #tpu.memory_space<smem>>) -> (i32, i32, i32) {
    %c3 = arith.constant 3 : index
    %0 = memref.load %arg1[%c3] : memref<4xi32, #tpu.memory_space<smem>>
    %c0_i32 = arith.constant 0 : i32
    %c0_i32_0 = arith.constant 0 : i32
    %c0_i32_1 = arith.constant 0 : i32
    return %0, %c0_i32, %c0_i32_0 : i32, i32, i32
  }
  func.func @transform_5(%arg0: i32, %arg1: memref<4xi32, #tpu.memory_space<smem>>) -> (i32, i32) {
    %c0_i32 = arith.constant 0 : i32
    %c0_i32_0 = arith.constant 0 : i32
    %c0_i32_1 = arith.constant 0 : i32
    return %c0_i32, %c0_i32_0 : i32, i32
  }
  func.func @transform_6(%arg0: i32, %arg1: memref<4xi32, #tpu.memory_space<smem>>) -> (i32, i32) {
    %c0_i32 = arith.constant 0 : i32
    %c0_i32_0 = arith.constant 0 : i32
    %c0_i32_1 = arith.constant 0 : i32
    return %c0_i32, %c0_i32_0 : i32, i32
  }
}

</mosaic_0001>

<bundles_post_ra>
// kernel: fwd.1
= control target key start
LH: loop header
LB: loop body
LE: loop exit
PB: predicated region body
PF: predicated region fallthrough
CT: control target
= control target key end

     0   :  { %s620_s0 = inlined_call_operand.vmem [shape: s32[4], index: 0, kind: input, shape index: {}]   ;;  %s621_s1 = inlined_call_operand.vmem [shape: f32[48,1], index: 1, kind: input, shape index: {}]   ;;  %s622_s2 = inlined_call_operand.hbm [shape: f32[5,32,256], index: 2, kind: input, shape index: {}, may-alias: {2,3}]   ;;  %s623_s3 = inlined_call_operand.hbm [shape: f32[5,32,256], index: 3, kind: input, shape index: {}, may-alias: {2,3}]   ;;  %s624_s4 = inlined_call_operand.hbm [shape: f32[125,1,256], index: 4, kind: input, shape index: {}, may-alias: {4,5}]   ;;  %s625_s5 = inlined_call_operand.hbm [shape: f32[125,1,256], index: 5, kind: input, shape index: {}, may-alias: {4,5}]   ;;  %s626_s6 = inlined_call_operand.vmem [shape: f32[1,256], index: 6, kind: output, shape index: {0}]   ;;  %s627_s7 = inlined_call_operand.hbm [shape: s32[1,1], index: 7, kind: output, shape index: {1}]  }
   0x1   :  { %s13_s26 = sshll.u32 %s620_s0, 4  ;;  %s14_s26 = int_to_ptr.vmem [resolvable:$true] %s13_s26 }
   0x2   :  { %s337_s27 = scalar_lea.vmem %s14_s26, 16  ;;  %p342_p1 = scmp.lt.s32.totalorder %s14_s26, %s14_s26 }
   0x3   :  { %p338_p0 = scmp.ne.s32.totalorder %s14_s26, %s337_s27  ;;  %p343_p2 = scmp.lt.s32.totalorder %s337_s27, %s337_s27 }
   0x5   :  { %p344_p3 = por %p343_p2, %p342_p1 }
   0x7   :  { %p345_p4 = pnand %p344_p3, %p338_p0 }
   0x9   :  { %348 = shalt.err (!%p345_p4)  }
   0xa   :  { %s465_s28 = smov [#allocation3]  }
   0xb   :  { %16 = dma.vmem_to_smem %s14_s26, 16, %s465_s28, [#allocation2] }
   0xc   :  { %455 = dma.done.wait [#allocation2], 16 }
   0xd   :  { %456 = vsyncadd [#allocation2], 4294967280 }
   0xe   :  { %18 = sfence }
   0xf   :  { %19 = vsyncpa [#allocation5], 0 }
  0x10   :  { %20 = vsyncpa [#allocation8], 0 }
  0x11   :  { %21 = vsyncpa [#allocation11], 0 }
  0x12   :  { %22 = vsyncpa [#allocation6], 0  ;;  %s310_s29 = sld [smem:[#allocation3 + $0x1]]  ;;  %s466_s30 = smov [#allocation7]  }
  0x13   :  { %s50_s0 = sshll.u32 %s466_s30, 4  ;;  %s518_s8 = sld [smem:[#allocation3]]  ;;  %s520_s0 = int_to_ptr.vmem [resolvable:$true] %s50_s0 }
  0x14   :  { %s467_s9 = smov [#allocation4]   ;;  %s522_s11 = sld [smem:[#allocation3 + $0x2]] }
  0x15   :  { %s34_s10 = sshll.u32 %s467_s9, 4  ;;  %s468_s12 = smov [#allocation9]   ;;  %s524_s10 = int_to_ptr.vmem [resolvable:$true] %s34_s10 }
  0x16   :  { %s67_s13 = sshll.u32 %s468_s12, 4  ;;  %s526_s14 = sld [smem:[#allocation3 + $0x3]]  ;;  %s528_s13 = int_to_ptr.vmem [resolvable:$true] %s67_s13 }
  0x17   :  { %s351_s23 = scalar_lea.hbm %s623_s3, 5120 }
  0x18   :  { %s320_s15 = sshll.u32 %s310_s29, 10 }
  0x19   :  { %s49_s18 = scalar_lea.hbm %s623_s3, %s320_s15  ;;  %s319_s19 = sshll.u32 %s518_s8, 10 }
  0x1a   :  { %s349_s20 = scalar_lea.hbm %s49_s18, 1024  ;;  %p352_p6 = scmp.lt.u32.totalorder %s49_s18, %s623_s3 }
  0x1b   :  { %p350_p5 = scmp.ne.s32.totalorder %s49_s18, %s349_s20  ;;  %p353_p7 = scmp.lt.u32.totalorder %s351_s23, %s349_s20 }
  0x1c   :  { %p355_p9 = scmp.lt.u32.totalorder %s349_s20, %s49_s18 }
  0x1d   :  { %p354_p8 = por %p353_p7, %p352_p6 }
  0x1f   :  { %p356_p10 = por %p355_p9, %p354_p8 }
  0x21   :  { %p357_p11 = pnand %p356_p10, %p350_p5 }
  0x23   :  { %360 = shalt.err (!%p357_p11)
}
  0x24   :  { %s361_s26 = scalar_lea.vmem %s520_s0, 1024  ;;  %p366_p13 = scmp.lt.s32.totalorder %s520_s0, %s520_s0 }
  0x25   :  { %p362_p12 = scmp.ne.s32.totalorder %s520_s0, %s361_s26  ;;  %p367_p0 = scmp.lt.s32.totalorder %s361_s26, %s361_s26 }
  0x27   :  { %p368_p1 = por %p367_p0, %p366_p13 }
  0x29   :  { %p369_p2 = pnand %p368_p1, %p362_p12 }
  0x2b   :  { %372 = shalt.err (!%p369_p2)
}
  0x2c   :  { %s469_s27 = smov 256   ;;  %s470_s3 = smov 16  }
  0x2d   :  { %56 = dma.hbm_to_vmem [thread:$0]  %s49_s18, 1024, %s520_s0, [#allocation8], %s469_s27, %s469_s27, %s470_s3  }
  0x2e   :  { %s33_s30 = scalar_lea.hbm %s622_s2, %s319_s19  ;;  %s321_s8 = sshll.u32 %s522_s11, 5 }
  0x2f   :  { %s373_s9 = scalar_lea.hbm %s33_s30, 1024  ;;  %s375_s16 = scalar_lea.hbm %s622_s2, 5120 }
  0x30   :  { %p374_p3 = scmp.ne.s32.totalorder %s33_s30, %s373_s9  ;;  %p376_p4 = scmp.lt.u32.totalorder %s33_s30, %s622_s2 }
  0x31   :  { %p377_p5 = scmp.lt.u32.totalorder %s375_s16, %s373_s9  ;;  %p379_p7 = scmp.lt.u32.totalorder %s373_s9, %s33_s30 }
  0x33   :  { %p378_p6 = por %p377_p5, %p376_p4 }
  0x35   :  { %p380_p8 = por %p379_p7, %p378_p6 }
  0x37   :  { %p381_p9 = pnand %p380_p8, %p374_p3 }
  0x39   :  { %384 = shalt.err (!%p381_p9)
}
  0x3a   :  { %s385_s0 = scalar_lea.vmem %s524_s10, 1024  ;;  %p390_p11 = scmp.lt.s32.totalorder %s524_s10, %s524_s10 }
  0x3b   :  { %p386_p10 = scmp.ne.s32.totalorder %s524_s10, %s385_s0  ;;  %p391_p12 = scmp.lt.s32.totalorder %s385_s0, %s385_s0 }
  0x3d   :  { %p392_p13 = por %p391_p12, %p390_p11 }
  0x3f   :  { %p393_p0 = pnand %p392_p13, %p386_p10 }
  0x41   :  { %396 = shalt.err (!%p393_p0)
}
  0x42   :  { %40 = dma.hbm_to_vmem [thread:$0]  %s33_s30, 1024, %s524_s10, [#allocation5], %s469_s27, %s469_s27, %s470_s3  }
  0x43   :  { %s65_s18 = scalar_lea.hbm %s624_s4, %s321_s8  ;;  %s322_s19 = sshll.u32 %s526_s14, 5 }
  0x44   :  { %s397_s21 = scalar_lea.hbm %s65_s18, 32  ;;  %s399_s24 = scalar_lea.hbm %s624_s4, 4000 }
  0x45   :  { %p398_p1 = scmp.ne.s32.totalorder %s65_s18, %s397_s21  ;;  %p400_p2 = scmp.lt.u32.totalorder %s65_s18, %s624_s4 }
  0x46   :  { %p401_p3 = scmp.lt.u32.totalorder %s399_s24, %s397_s21  ;;  %p403_p5 = scmp.lt.u32.totalorder %s397_s21, %s65_s18 }
  0x48   :  { %p402_p4 = por %p401_p3, %p400_p2 }
  0x4a   :  { %p404_p6 = por %p403_p5, %p402_p4 }
  0x4c   :  { %p405_p7 = pnand %p404_p6, %p398_p1 }
  0x4e   :  { %408 = shalt.err (!%p405_p7)
}
  0x4f   :  { %s409_s10 = scalar_lea.vmem %s528_s13, 32  ;;  %p414_p9 = scmp.lt.s32.totalorder %s528_s13, %s528_s13 }
  0x50   :  { %p410_p8 = scmp.ne.s32.totalorder %s528_s13, %s409_s10  ;;  %p415_p10 = scmp.lt.s32.totalorder %s409_s10, %s409_s10 }
  0x52   :  { %p416_p11 = por %p415_p10, %p414_p9 }
  0x54   :  { %p417_p12 = pnand %p416_p11, %p410_p8 }
  0x56   :  { %420 = shalt.err (!%p417_p12)
}
  0x57   :  { %70 = dma.hbm_to_vmem [thread:$0]  %s65_s18, 32, %s528_s13, [#allocation8]  }
  0x58   :  { %s79_s27 = scalar_lea.hbm %s625_s5, %s322_s19  ;;  %s471_s3 = smov [#allocation10]  }
  0x59   :  { %s81_s28 = sshll.u32 %s471_s3, 4  ;;  %s421_s29 = scalar_lea.hbm %s79_s27, 32  ;;  %s82_s28 = int_to_ptr.vmem [resolvable:$true] %s81_s28 }
  0x5a   :  { %p422_p13 = scmp.ne.s32.totalorder %s79_s27, %s421_s29  ;;  %s423_s9 = scalar_lea.hbm %s625_s5, 4000 }
  0x5b   :  { %p424_p0 = scmp.lt.u32.totalorder %s79_s27, %s625_s5  ;;  %p425_p1 = scmp.lt.u32.totalorder %s423_s9, %s421_s29 }
  0x5c   :  { %p427_p3 = scmp.lt.u32.totalorder %s421_s29, %s79_s27 }
  0x5d   :  { %p426_p2 = por %p425_p1, %p424_p0 }
  0x5f   :  { %p428_p4 = por %p427_p3, %p426_p2 }
  0x61   :  { %p429_p5 = pnand %p428_p4, %p422_p13 }
  0x63   :  { %432 = shalt.err (!%p429_p5)
}
  0x64   :  { %s433_s13 = scalar_lea.vmem %s82_s28, 32  ;;  %p438_p7 = scmp.lt.s32.totalorder %s82_s28, %s82_s28 }
  0x65   :  { %p434_p6 = scmp.ne.s32.totalorder %s82_s28, %s433_s13  ;;  %p439_p8 = scmp.lt.s32.totalorder %s433_s13, %s433_s13 }
  0x67   :  { %p440_p9 = por %p439_p8, %p438_p7 }
  0x69   :  { %p441_p10 = pnand %p440_p9, %p434_p6 }
  0x6b   :  { %444 = shalt.err (!%p441_p10)
}
  0x6c   :  { %84 = dma.hbm_to_vmem [thread:$0]  %s79_s27, 32, %s82_s28, [#allocation11]  }
  0x6d   :  { %457 = dma.done.wait [#allocation5], 1024  }
  0x6e   :  { %458 = vsyncadd [#allocation5], 4294966272 }
  0x6f   :  { %459 = dma.done.wait [#allocation8], 1056  }
  0x70   :  { %460 = vsyncadd [#allocation8], 4294966240 }
  0x71   :  { %461 = dma.done.wait [#allocation11], 32  }
  0x72   :  { %462 = vsyncadd [#allocation11], 4294967264  ;;  %v472_v0 = vmov 0   ;;  %v103_v1 = vld [vmem:[%s621_s1 + $0x10] sm:$0xff]  ;;  %v101_v2 = vld [vmem:[%s621_s1] sm:$0xff]  ;;  %s445_s4 = scalar_lea.hbm %s627_s7, 16 }
  0x73   :  { %336 = vset.pattern.permute.xlu1 %v472_v0  ;;  %335 = vset.pattern.permute.xlu0 %v472_v0  ;;  %v104_v3 = vld [vmem:[%s621_s1 + $0x18] sm:$0xff]  ;;  %v102_v4 = vld [vmem:[%s621_s1 + $0x8] sm:$0xff]  ;;  %v105_v7 = vld [vmem:[#allocation4] sm:$0xff]  ;;  %p446_p11 = scmp.ne.s32.totalorder %s627_s7, %s445_s4  ;;  %p449_p12 = scmp.lt.u32.totalorder %s445_s4, %s627_s7 }
  0x74   :  { %125 = vperm.xlu1 %336, %v103_v1   ;;  %115 = vperm.xlu0 %335, %v101_v2   ;;  %v106_v8 = vld [vmem:[#allocation4 + $0x8] sm:$0xff]  ;;  %v109_v9 = vld [vmem:[#allocation4 + $0x20] sm:$0xff]  ;;  %v107_v12 = vld [vmem:[#allocation4 + $0x10] sm:$0xff] }
  0x75   :  { %v159_v10 = vld [vmem:[#allocation7] sm:$0xff]  ;;  %v160_v11 = vld [vmem:[#allocation7 + $0x8] sm:$0xff]  ;;  %v108_v13 = vld [vmem:[#allocation4 + $0x18] sm:$0xff]  ;;  %p451_p13 = pnand %p449_p12, %p446_p11 }
  0x76   :  { %v161_v14 = vld [vmem:[#allocation7 + $0x10] sm:$0xff]  ;;  %v162_v15 = vld [vmem:[#allocation7 + $0x18] sm:$0xff]  ;;  %v110_v16 = vld [vmem:[#allocation4 + $0x28] sm:$0xff] }
  0x77   :  { %v163_v17 = vld [vmem:[#allocation7 + $0x20] sm:$0xff]  ;;  %v164_v18 = vld [vmem:[#allocation7 + $0x28] sm:$0xff]  ;;  %v111_v24 = vld [vmem:[#allocation4 + $0x30] sm:$0xff] }
  0x78   :  { %130 = vperm.xlu1 %336, %v104_v3   ;;  %120 = vperm.xlu0 %335, %v102_v4   ;;  %v112_v25 = vld [vmem:[#allocation4 + $0x38] sm:$0xff]  ;;  %v165_v26 = vld [vmem:[#allocation7 + $0x30] sm:$0xff] }
  0x79   :  { %v166_v27 = vld [vmem:[#allocation7 + $0x38] sm:$0xff] }
  0xf3   :  { %v126_v5 = vpop.permute.xlu1 %125  ;;  %v116_v6 = vpop.permute.xlu0 %115 }
  0xf4   :  { %v133_v20 = vmul.f32 %v116_v6, %v105_v7  ;;  %v134_v21 = vmul.f32 %v116_v6, %v106_v8  ;;  %v167_v22 = vmul.f32 %v159_v10, %v116_v6  ;;  %v168_v23 = vmul.f32 %v160_v11, %v116_v6 }
  0xf5   :  { %v137_v33 = vmul.f32 %v126_v5, %v109_v9  ;;  %v138_v34 = vmul.f32 %v126_v5, %v110_v16  ;;  %v171_v35 = vmul.f32 %v163_v17, %v126_v5  ;;  %v172_v36 = vmul.f32 %v164_v18, %v126_v5 }
  0xf7   :  { %v121_v19 = vpop.permute.xlu0 %120  ;;  %v131_v28 = vpop.permute.xlu1 %130 }
  0xf8   :  { %v135_v29 = vmul.f32 %v121_v19, %v107_v12  ;;  %v136_v30 = vmul.f32 %v121_v19, %v108_v13  ;;  %v169_v31 = vmul.f32 %v161_v14, %v121_v19  ;;  %v170_v32 = vmul.f32 %v162_v15, %v121_v19 }
  0xf9   :  { %v139_v41 = vmul.f32 %v131_v28, %v111_v24  ;;  %v140_v42 = vmul.f32 %v131_v28, %v112_v25  ;;  %v173_v43 = vmul.f32 %v165_v26, %v131_v28  ;;  %v174_v44 = vmul.f32 %v166_v27, %v131_v28 }
  0xfa   :  { %v141_v37 = vadd.f32 %v135_v29, %v133_v20  ;;  %v150_v38 = vadd.f32 %v136_v30, %v134_v21  ;;  %v175_v39 = vadd.f32 %v169_v31, %v167_v22  ;;  %v184_v40 = vadd.f32 %v170_v32, %v168_v23  ;;  %v249_v22 = vld [vmem:[%s621_s1 + $0x28] sm:$0x1]  ;;  %v248_v23 = vld [vmem:[%s621_s1 + $0x20] sm:$0x1] }
  0xfb   :  { %v473_v24 = vmov 1966171168   ;;  %v215_v26 = vlaneseq }
  0xfc   :  { %v142_v45 = vadd.f32 %v141_v37, %v137_v33  ;;  %v151_v46 = vadd.f32 %v150_v38, %v138_v34  ;;  %v176_v47 = vadd.f32 %v175_v39, %v171_v35  ;;  %v185_v48 = vadd.f32 %v184_v40, %v172_v36  ;;  %v228_v40 = vld [vmem:[#allocation10] sm:$0x3] }
  0xfd   :  { %v213_v25 = vunpack.c.l.s4 %v473_v24  ;;  %v216_v28 = vshrl.u32 %v215_v26, 7  ;;  %vm274_vm1 = vcmp.lt.s32.totalorder %v215_v26, 256 }
  0xfe   :  { %v143_v49 = vadd.f32 %v142_v45, %v139_v41  ;;  %v152_v50 = vadd.f32 %v151_v46, %v140_v42  ;;  %v177_v51 = vadd.f32 %v176_v47, %v173_v43  ;;  %v186_v52 = vadd.f32 %v185_v48, %v174_v44  ;;  %v206_v41 = vld [vmem:[#allocation9] sm:$0x3] }
  0xff   :  { %v214_v27 = vunpack.c.0.s8 %v213_v25  ;;  %v256_v34 = vsub.s32 0, %v216_v28 }
 0x100   :  { %v144_v53 = vrot.slane %v143_v49, 4  ;;  %v153_v54 = vrot.slane %v152_v50, 4  ;;  %v178_v55 = vrot.slane %v177_v51, 4  ;;  %v187_v56 = vrot.slane %v186_v52, 4 }
 0x101   :  { %v217_v32 = vsub.s32 %v214_v27, %v216_v28 }
 0x102   :  { %v145_v57 = vadd.f32 %v144_v53, %v143_v49  ;;  %v154_v58 = vadd.f32 %v153_v54, %v152_v50  ;;  %v179_v59 = vadd.f32 %v178_v55, %v177_v51  ;;  %v188_v60 = vadd.f32 %v187_v56, %v186_v52 }
 0x104   :  { %v146_v61 = vrot.slane %v145_v57, 2  ;;  %v155_v62 = vrot.slane %v154_v58, 2  ;;  %v180_v63 = vrot.slane %v179_v59, 2  ;;  %v189_v1 = vrot.slane %v188_v60, 2 }
 0x106   :  { %v147_v2 = vadd.f32 %v146_v61, %v145_v57  ;;  %v156_v3 = vadd.f32 %v155_v62, %v154_v58  ;;  %v181_v4 = vadd.f32 %v180_v63, %v179_v59  ;;  %v190_v5 = vadd.f32 %v189_v1, %v188_v60 }
 0x108   :  { %v148_v6 = vrot.slane %v147_v2, 1  ;;  %v157_v7 = vrot.slane %v156_v3, 1  ;;  %v182_v8 = vrot.slane %v181_v4, 1  ;;  %v191_v9 = vrot.slane %v190_v5, 1 }
 0x10a   :  { %v149_v10 = vadd.f32 %v148_v6, %v147_v2  ;;  %v158_v11 = vadd.f32 %v157_v7, %v156_v3  ;;  %v183_v12 = vadd.f32 %v182_v8, %v181_v4  ;;  %v192_v13 = vadd.f32 %v191_v9, %v190_v5 }
 0x10c   :  { %v195_v14 = vmax.f32 %v149_v10, %v183_v12  ;;  %v196_v15 = vmax.f32 %v158_v11, %v192_v13  ;;  %v231_v16 = vcombine.low %v183_v12, %v192_v13  ;;  %v193_v17 = vmin.f32 %v149_v10, %v183_v12 }
 0x10d   :  { %v194_v18 = vmin.f32 %v158_v11, %v192_v13  ;;  %v211_v19 = vcombine.low %v149_v10, %v158_v11 }
 0x10e   :  { %v200_v20 = vmax.f32 %v195_v14, %v196_v15  ;;  %v238_v37 = vrot.slane %v231_v16, %v217_v32 }
 0x10f   :  { %v197_v21 = vmin.f32 %v193_v17, %v194_v18  ;;  %v218_v38 = vrot.slane %v211_v19, %v217_v32 }
 0x110   :  { %201 = vmax.xlane.f32.xlu1 %v200_v20  ;;  %v245_v42 = vrot.slane %v238_v37, %v217_v32 }
 0x111   :  { %198 = vmin.xlane.f32.xlu0 %v197_v21  ;;  %v225_v43 = vrot.slane %v218_v38, %v217_v32 }
 0x121   :  { %262 = vperm.xlu1 %336, %v249_v22  }
 0x127   :  { %252 = vperm.xlu0 %335, %v248_v23  }
 0x19d   :  { %v202_v29 = vpop.xlane.xlu1 %201 }
 0x19e   :  { %v204_v30 = vmul.f32 0.1, %v202_v29  ;;  %v199_v31 = vpop.xlane.xlu0 %198 }
 0x19f   :  { %v203_v33 = vand.u32 2147483647, %v199_v31 }
 0x1a1   :  { %vm205_vm0 = vcmp.gt.f32.partialorder %v203_v33, %v204_v30  ;;  %v263_v35 = vpop.permute.xlu1 %262 }
 0x1a2   :  { %v207_v36 = vsel %vm205_vm0, 1, %v472_v0  ;;  %v267_v39 = vrot.slane %v263_v35, %v256_v34  ;;  %v247_v46 = vsel %vm205_vm0, %v228_v40, %v245_v42  ;;  %v227_v47 = vsel %vm205_vm0, %v206_v41, %v225_v43 }
 0x1a3   :  { %323 = vpush %v207_v36 }
 0x1a4   :  { %v269_v48 = vmul.f32 %v267_v39, %v247_v46 }
 0x1a6   :  { %v253_v44 = vpop.permute.xlu0 %252 }
 0x1a7   :  { %v257_v45 = vrot.slane %v253_v44, %v256_v34 }
 0x1a9   :  { %v259_v49 = vmul.f32 %v257_v45, %v227_v47 }
 0x1ab   :  { %v270_v50 = vadd.f32 %v269_v48, %v259_v49 }
 0x1ad   :  { %v271_v51 = vand.u32 2147483647, %v270_v50 }
 0x1af   :  { %276 = vst.msk [vmem:[%s626_s6] sm:$0x3] %vm274_vm1, %v271_v51 }
 0x1d4   :  { %s324_s25 = spop %323 }
 0x1d5   :  { %279 = sst [smem:[#allocation12]] %s324_s25 }
 0x1d6   :  { %454 = shalt.err (!%p451_p13)
}
 0x1d7   :  { %s474_s29 = smov [#allocation12]  }
 0x1d8   :  { %289 = dma.smem_to_hbm %s474_s29, 16, %s627_s7, [#allocation6]  }
 0x1d9   :  { %463 = dma.done.wait [#allocation6], 16  }
 0x1da   :  { %464 = vsyncadd [#allocation6], 4294967280 }
 0x1db   :  { %295 = sfence }
 0x1dc   :  { %296 = vsyncpa [#allocation5], 1 }
 0x1dd   :  { %297 = vsyncpa [#allocation8], 1 }
 0x1de   :  { %298 = vsyncpa [#allocation11], 1 }
 0x1df   :  { %299 = vsyncpa [#allocation6], 1 }

</bundles_post_ra>
